<compile_context>
chip_gen: v5e
topology: v5e:2x2
jax: 0.10.0
libtpu: 0.0.40
codegen_flags: <defaults>
</compile_context>

<pallas_src>
from functools import partial

import jax
import jax.numpy as jnp
from jax.experimental import pallas as pl
from jax.experimental.pallas import tpu as pltpu


# ---------------------------------------------------------------------------
# Kernels
# ---------------------------------------------------------------------------
def _nll_loss_kernel(pred_ref, target_ref, out_ref, *, batch_size, rows_per_split):
    """Partial sum of -pred[i, target[i]] for this split (pred already log-probs)."""
    split = pl.program_id(0)          # "parallel" axis (per-TC partial sum)
    i = pl.program_id(1)              # "arbitrary" reduction axis

    @pl.when(i == 0)
    def _init():
        out_ref[0, 0] = jnp.float32(0.0)

    pred = pred_ref[...].astype(jnp.float32)           # (TB, C) cast in-kernel
    target = target_ref[...]                           # (TB, 1) int32
    tb, nc = pred.shape

    # One-hot class select -> (TB, 1) column; only (TB,1)-sized row masking.
    class_ids = jax.lax.broadcasted_iota(jnp.int32, (tb, nc), 1)
    row_vals = jnp.sum(jnp.where(class_ids == target, pred, 0.0),
                       axis=-1, keepdims=True)         # (TB, 1)

    row_start = split * rows_per_split + i * tb
    valid = (jax.lax.broadcasted_iota(jnp.int32, (tb, 1), 0) + row_start) < batch_size
    out_ref[0, 0] += -jnp.sum(jnp.where(valid, row_vals, 0.0))


def _fused_logsoftmax_nll_kernel(logits_ref, target_ref, out_ref, *,
                                 batch_size, rows_per_split):
    """Partial sum of NLL with the upstream log_softmax fused (raw logits in)."""
    split = pl.program_id(0)
    i = pl.program_id(1)

    @pl.when(i == 0)
    def _init():
        out_ref[0, 0] = jnp.float32(0.0)

    x = logits_ref[...].astype(jnp.float32)            # (TB, C)
    target = target_ref[...]                           # (TB, 1) int32
    tb, nc = x.shape

    # Stable row-wise logsumexp (EUP exp + XLU lane reduce).
    row_max = jnp.max(x, axis=-1, keepdims=True)
    lse = row_max + jnp.log(jnp.sum(jnp.exp(x - row_max), axis=-1, keepdims=True))

    class_ids = jax.lax.broadcasted_iota(jnp.int32, (tb, nc), 1)
    tgt_logit = jnp.sum(jnp.where(class_ids == target, x, 0.0),
                        axis=-1, keepdims=True)        # (TB, 1)

    row_start = split * rows_per_split + i * tb
    valid = (jax.lax.broadcasted_iota(jnp.int32, (tb, 1), 0) + row_start) < batch_size
    # Keep this a select (NOT a multiply): garbage padded rows may produce
    # Inf/NaN in lse, which the select safely discards.
    out_ref[0, 0] += jnp.sum(jnp.where(valid, lse - tgt_logit, 0.0))


def _fused_fc_logsoftmax_nll_kernel(feat_ref, w_ref, b_ref, target_ref, out_ref, *,
                                    batch_size):
    """Final FC (features @ W + b) + log_softmax + mean NLL in one shot (single tile)."""
    x = jnp.dot(feat_ref[...], w_ref[...], preferred_element_type=jnp.float32)
    x = x + b_ref[...].astype(jnp.float32)             # (B, C) logits in f32
    target = target_ref[...]                           # (B, 1) int32
    bsz, nc = x.shape

    row_max = jnp.max(x, axis=-1, keepdims=True)
    lse = row_max + jnp.log(jnp.sum(jnp.exp(x - row_max), axis=-1, keepdims=True))

    class_ids = jax.lax.broadcasted_iota(jnp.int32, (bsz, nc), 1)
    tgt_logit = jnp.sum(jnp.where(class_ids == target, x, 0.0),
                        axis=-1, keepdims=True)

    out_ref[0, 0] = jnp.sum(lse - tgt_logit) * jnp.float32(1.0 / batch_size)


# ---------------------------------------------------------------------------
# Tiling helpers
# ---------------------------------------------------------------------------
def _round_up(x, m):
    return ((x + m - 1) // m) * m


def _vmem_capacity_bytes():
    try:
        return int(pltpu.get_tpu_info().vmem_capacity_bytes)
    except Exception:
        return 64 * 1024 * 1024       # conservative (v7x per-TC physical VMEM)


def _sublane_pack(itemsize):
    # Keep packed-sublane vregs full: f32 -> 8, bf16 -> 16, int8/fp8 -> 32.
    return {4: 8, 2: 16, 1: 32}.get(itemsize, 8)


def _pick_block_rows(batch, num_classes, itemsize, block_rows):
    pack = _sublane_pack(itemsize)
    if block_rows is not None:
        return block_rows
    # Lane-padded VMEM footprint per row: pred padded to round_up(C,128) lanes
    # plus the int32 target column padded to one full 128-lane tile.
    row_bytes = _round_up(num_classes, 128) * itemsize + 128 * 4
    # Keep double-buffered inputs within ~1/4 of physical VMEM:
    #   v7x (64 MiB/TC)   -> ~8192 f32 rows at C<=128
    #   v5e/v6e (128 MiB) -> ~16384 f32 rows
    # => ~1-4 MB of HBM bytes per grid step, amortizing per-step overhead.
    budget = _vmem_capacity_bytes() // 8
    tb = budget // max(1, row_bytes)
    tb = max(pack, min(16384, (tb // pack) * pack))
    if batch <= tb:
        return batch                   # single resident tile, grid of (1, 1)
    return tb


def _prepare_target(target, batch):
    if target.ndim == 1:
        target = target.reshape(batch, 1)
    if target.dtype != jnp.int32:      # no-op when caller already passes int32
        target = target.astype(jnp.int32)
    return target


# ---------------------------------------------------------------------------
# Wrappers
# ---------------------------------------------------------------------------
def _run_nll(kernel_body, pred, target, block_rows=None):
    batch, num_classes = pred.shape
    itemsize = pred.dtype.itemsize
    tb = _pick_block_rows(batch, num_classes, itemsize, block_rows)
    n_tiles = pl.cdiv(batch, tb)

    # Leading "parallel" axis: per-split SMEM partial sums let v7x use both
    # TensorCores; on single-TC chips the axis just runs sequentially.
    num_splits = 2 if (n_tiles >= 2 and n_tiles % 2 == 0) else 1
    tiles_per_split = n_tiles // num_splits
    rows_per_split = tiles_per_split * tb

    target2d = _prepare_target(target, batch)

    # Explicit VMEM limit sized from the (lane-padded) double-buffered inputs.
    padded_c = _round_up(num_classes, 128)
    in_bytes = 2 * tb * (padded_c * itemsize + 128 * 4)
    vmem_limit = int(min(int(_vmem_capacity_bytes() * 0.75),
                         max(32 * 1024 * 1024, in_bytes + 4 * 1024 * 1024)))

    out = pl.pallas_call(
        partial(kernel_body, batch_size=batch, rows_per_split=rows_per_split),
        out_shape=jax.ShapeDtypeStruct((num_splits, 1), jnp.float32),
        grid=(num_splits, tiles_per_split),
        in_specs=[
            pl.BlockSpec((tb, num_classes),
                         lambda c, i: (c * tiles_per_split + i, 0)),   # pred tile
            pl.BlockSpec((tb, 1),
                         lambda c, i: (c * tiles_per_split + i, 0)),   # target tile
        ],
        out_specs=pl.BlockSpec((1, 1), lambda c, i: (c, 0),
                               memory_space=pltpu.SMEM),
        compiler_params=pltpu.CompilerParams(
            dimension_semantics=("parallel", "arbitrary"),
            vmem_limit_bytes=vmem_limit),
    )(pred, target2d)

    return jnp.sum(out) * jnp.float32(1.0 / batch)


def get_loss(pred, target, trans_feat=None, *, block_rows=None):
    """Exact equivalent of get_loss.forward: F.nll_loss(pred, target), mean reduction.

    `pred` must already be log-probabilities (e.g. output of log_softmax).
    """
    del trans_feat
    return _run_nll(_nll_loss_kernel, pred, target, block_rows)


def get_loss_from_logits(logits, target, trans_feat=None, *, block_rows=None):
    """Fused log_softmax + NLL (mean). Use when the caller has raw logits.

    Optimized for the small-B fusion win (removes the standalone (B, C)
    log_softmax HBM round trip + one dispatch). Note: for large B with small C
    this path is EUP-bound (exp runs on all 128 physical lanes regardless of C),
    so it is not a large-B streaming kernel.
    """
    del trans_feat
    return _run_nll(_fused_logsoftmax_nll_kernel, logits, target, block_rows)


def get_loss_from_fc(features, weight, bias, target, trans_feat=None):
    """Deepest fusion: final FC layer + log_softmax + mean NLL in one pallas_call.

    features: (B, K), weight: (K, C), bias: (C,), target: (B,).
    Intended for classification-head shapes (single VMEM tile, grid of 1).
    """
    del trans_feat
    batch, k = features.shape
    _, num_classes = weight.shape
    target2d = _prepare_target(target, batch)
    bias2d = bias.reshape(1, num_classes)

    out = pl.pallas_call(
        partial(_fused_fc_logsoftmax_nll_kernel, batch_size=batch),
        out_shape=jax.ShapeDtypeStruct((1, 1), jnp.float32),
        grid=(1,),
        in_specs=[
            pl.BlockSpec((batch, k), lambda i: (0, 0)),
            pl.BlockSpec((k, num_classes), lambda i: (0, 0)),
            pl.BlockSpec((1, num_classes), lambda i: (0, 0)),
            pl.BlockSpec((batch, 1), lambda i: (0, 0)),
        ],
        out_specs=pl.BlockSpec((1, 1), lambda i: (0, 0), memory_space=pltpu.SMEM),
        compiler_params=pltpu.CompilerParams(dimension_semantics=("arbitrary",)),
    )(features, weight, bias2d, target2d)

    return out[0, 0]


# ---------------------------------------------------------------------------
# Self-test
# ---------------------------------------------------------------------------
if __name__ == "__main__":
    key = jax.random.PRNGKey(0)
    k_logits, k_target, k_trans, k_big, k_feat, k_w, k_b = jax.random.split(key, 7)

    B, NUM_CLASSES = 8, 16

    logits = jax.random.normal(k_logits, (B, NUM_CLASSES), dtype=jnp.float32)
    pred = jax.nn.log_softmax(logits, axis=-1)                    # (B, C) log-probs
    target = jax.random.randint(k_target, (B,), 0, NUM_CLASSES, dtype=jnp.int32)
    trans_feat = jax.random.normal(k_trans, (B, 3, 3), dtype=jnp.float32)  # unused

    ref = -jnp.mean(pred[jnp.arange(B), target])

    # 1) Module-faithful path: NLL on precomputed log-probs.
    loss = jax.block_until_ready(get_loss(pred, target, trans_feat))
    assert jnp.allclose(loss, ref, atol=1e-6, rtol=1e-6), (loss, ref)

    # 2) Fused path: raw logits in, log_softmax computed inside the kernel.
    loss_fused = jax.block_until_ready(get_loss_from_logits(logits, target, trans_feat))
    assert jnp.allclose(loss_fused, ref, atol=1e-5, rtol=1e-5), (loss_fused, ref)

    # 3) Native bf16 logits (cast happens inside the kernel).
    logits_bf16 = logits.astype(jnp.bfloat16)
    loss_bf16 = jax.block_until_ready(get_loss_from_logits(logits_bf16, target))
    pred_bf16_ref = jax.nn.log_softmax(logits_bf16.astype(jnp.float32), axis=-1)
    ref_bf16 = -jnp.mean(pred_bf16_ref[jnp.arange(B), target])
    assert jnp.allclose(loss_bf16, ref_bf16, atol=1e-2, rtol=1e-2), (loss_bf16, ref_bf16)

    # 4) Tiled/grid path (odd tile count -> single split; partial last tile).
    for B2 in (24, 20):
        lg2 = jax.random.normal(jax.random.fold_in(k_big, B2), (B2, NUM_CLASSES),
                                dtype=jnp.float32)
        pr2 = jax.nn.log_softmax(lg2, axis=-1)
        tg2 = jax.random.randint(jax.random.fold_in(k_target, B2), (B2,), 0,
                                 NUM_CLASSES, dtype=jnp.int32)
        ref2 = -jnp.mean(pr2[jnp.arange(B2), tg2])
        l2 = jax.block_until_ready(get_loss(pr2, tg2, block_rows=8))
        assert jnp.allclose(l2, ref2, atol=1e-5, rtol=1e-5), (B2, l2, ref2)
        l2f = jax.block_until_ready(get_loss_from_logits(lg2, tg2, block_rows=8))
        assert jnp.allclose(l2f, ref2, atol=1e-5, rtol=1e-5), (B2, l2f, ref2)

    # 5) Even tile count -> exercises the 2-way "parallel" split (v7x 2-TC path).
    B3 = 32
    lg3 = jax.random.normal(jax.random.fold_in(k_big, B3), (B3, NUM_CLASSES),
                            dtype=jnp.float32)
    pr3 = jax.nn.log_softmax(lg3, axis=-1)
    tg3 = jax.random.randint(jax.random.fold_in(k_target, B3), (B3,), 0,
                             NUM_CLASSES, dtype=jnp.int32)
    ref3 = -jnp.mean(pr3[jnp.arange(B3), tg3])
    l3 = jax.block_until_ready(get_loss(pr3, tg3, block_rows=8))
    assert jnp.allclose(l3, ref3, atol=1e-5, rtol=1e-5), (l3, ref3)
    l3f = jax.block_until_ready(get_loss_from_logits(lg3, tg3, block_rows=8))
    assert jnp.allclose(l3f, ref3, atol=1e-5, rtol=1e-5), (l3f, ref3)

    # 6) Fully fused FC + log_softmax + NLL path.
    K = 32
    feats = jax.random.normal(k_feat, (B, K), dtype=jnp.float32)
    w = jax.random.normal(k_w, (K, NUM_CLASSES), dtype=jnp.float32) * 0.1
    b = jax.random.normal(k_b, (NUM_CLASSES,), dtype=jnp.float32) * 0.1
    lg_fc = feats @ w + b
    pr_fc = jax.nn.log_softmax(lg_fc, axis=-1)
    ref_fc = -jnp.mean(pr_fc[jnp.arange(B), target])
    l_fc = jax.block_until_ready(get_loss_from_fc(feats, w, b, target))
    assert jnp.allclose(l_fc, ref_fc, atol=1e-5, rtol=1e-5), (l_fc, ref_fc)

    print("KERNEL_OK")
</pallas_src>

<mosaic_0001>
module attributes {stable_mosaic.version = 11 : i64} {
  func.func @_nll_loss_kernel(%arg0: i32, %arg1: i32, %arg2: memref<8x16xf32, #tpu.memory_space<vmem>>, %arg3: memref<8x1xi32, #tpu.memory_space<vmem>>, %arg4: memref<1x1xf32, #tpu.memory_space<smem>>) attributes {dimension_semantics = [#tpu.dimension_semantics<parallel>, #tpu.dimension_semantics<arbitrary>], iteration_bounds = array<i64: 1, 1>, scalar_prefetch = 0 : i64, scratch_operands = 0 : i64, tpu.core_type = #tpu.core_type<tc>, window_params = [{transform_indices = @transform_0, window_bounds = array<i64: 8, 16>}, {transform_indices = @transform_1, window_bounds = array<i64: 8, 1>}, {transform_indices = @transform_2, window_bounds = array<i64: 1, 1>}]} {
    %c0_i32 = arith.constant 0 : i32
    %0 = arith.cmpi eq, %arg1, %c0_i32 : i32
    %1 = arith.extui %0 : i1 to i32
    %c0_i32_0 = arith.constant 0 : i32
    %2 = arith.cmpi ne, %1, %c0_i32_0 : i32
    scf.if %2 {
      %cst_14 = arith.constant 0.000000e+00 : f32
      %c0_15 = arith.constant 0 : index
      %c0_16 = arith.constant 0 : index
      %30 = memref.load %arg4[%c0_15, %c0_16] : memref<1x1xf32, #tpu.memory_space<smem>>
      memref.store %cst_14, %arg4[%c0_15, %c0_16] : memref<1x1xf32, #tpu.memory_space<smem>>
    } else {
    }
    %c0 = arith.constant 0 : index
    %c0_1 = arith.constant 0 : index
    %3 = vector.load %arg2[%c0, %c0_1] : memref<8x16xf32, #tpu.memory_space<vmem>>, vector<8x16xf32>
    %c0_2 = arith.constant 0 : index
    %c0_3 = arith.constant 0 : index
    %4 = vector.load %arg3[%c0_2, %c0_3] : memref<8x1xi32, #tpu.memory_space<vmem>>, vector<8x1xi32>
    %5 = tpu.iota {dimensions = array<i32: 1>} : vector<8x16xi32>
    %6 = vector.broadcast %4 : vector<8x1xi32> to vector<8x16xi32>
    %7 = arith.cmpi eq, %5, %6 : vector<8x16xi32>
    %cst = arith.constant 0.000000e+00 : f32
    %8 = vector.broadcast %cst : f32 to vector<8x16xf32>
    %9 = arith.select %7, %3, %8 : vector<8x16xi1>, vector<8x16xf32>
    %cst_4 = arith.constant dense<0.000000e+00> : vector<8xf32>
    %10 = vector.multi_reduction <add>, %9, %cst_4 [1] : vector<8x16xf32> to vector<8xf32>
    %11 = vector.shape_cast %10 : vector<8xf32> to vector<8x1xf32>
    %c8_i32 = arith.constant 8 : i32
    %12 = arith.muli %arg0, %c8_i32 : i32
    %c8_i32_5 = arith.constant 8 : i32
    %13 = arith.muli %arg1, %c8_i32_5 : i32
    %14 = arith.addi %12, %13 : i32
    %15 = tpu.iota {dimensions = array<i32: 0>} : vector<8x1xi32>
    %16 = vector.broadcast %14 : i32 to vector<8x1xi32>
    %17 = arith.addi %15, %16 : vector<8x1xi32>
    %c8_i32_6 = arith.constant 8 : i32
    %18 = vector.broadcast %c8_i32_6 : i32 to vector<8x1xi32>
    %19 = arith.cmpi slt, %17, %18 : vector<8x1xi32>
    %c0_7 = arith.constant 0 : index
    %c0_8 = arith.constant 0 : index
    %20 = memref.load %arg4[%c0_7, %c0_8] : memref<1x1xf32, #tpu.memory_space<smem>>
    %cst_9 = arith.constant 0.000000e+00 : f32
    %21 = vector.broadcast %cst_9 : f32 to vector<8x1xf32>
    %22 = arith.select %19, %11, %21 : vector<8x1xi1>, vector<8x1xf32>
    %23 = vector.shape_cast %22 : vector<8x1xf32> to vector<1x8x1xf32>
    %cst_10 = arith.constant dense<0.000000e+00> : vector<1xf32>
    %24 = vector.multi_reduction <add>, %23, %cst_10 [1, 2] : vector<1x8x1xf32> to vector<1xf32>
    %25 = vector.shape_cast %24 : vector<1xf32> to vector<1x1x1xf32>
    %26 = vector.extract %25[0, 0, 0] : f32 from vector<1x1x1xf32>
    %cst_11 = arith.constant 0.000000e+00 : f32
    %27 = arith.subf %cst_11, %26 : f32
    %28 = arith.addf %20, %27 : f32
    %c0_12 = arith.constant 0 : index
    %c0_13 = arith.constant 0 : index
    %29 = memref.load %arg4[%c0_12, %c0_13] : memref<1x1xf32, #tpu.memory_space<smem>>
    memref.store %28, %arg4[%c0_12, %c0_13] : memref<1x1xf32, #tpu.memory_space<smem>>
    return
  }
  func.func @transform_0(%arg0: i32, %arg1: i32) -> (i32, i32) {
    %c1_i32 = arith.constant 1 : i32
    %0 = arith.muli %arg0, %c1_i32 : i32
    %1 = arith.addi %0, %arg1 : i32
    %c0_i32 = arith.constant 0 : i32
    %c0_i32_0 = arith.constant 0 : i32
    return %1, %c0_i32 : i32, i32
  }
  func.func @transform_1(%arg0: i32, %arg1: i32) -> (i32, i32) {
    %c1_i32 = arith.constant 1 : i32
    %0 = arith.muli %arg0, %c1_i32 : i32
    %1 = arith.addi %0, %arg1 : i32
    %c0_i32 = arith.constant 0 : i32
    %c0_i32_0 = arith.constant 0 : i32
    return %1, %c0_i32 : i32, i32
  }
  func.func @transform_2(%arg0: i32, %arg1: i32) -> (i32, i32) {
    %c0_i32 = arith.constant 0 : i32
    %c0_i32_0 = arith.constant 0 : i32
    return %arg0, %c0_i32 : i32, i32
  }
}

</mosaic_0001>

<bundles_post_ra>
// kernel: tpu_custom_call.1
= control target key start
LH: loop header
LB: loop body
LE: loop exit
PB: predicated region body
PF: predicated region fallthrough
CT: control target
= control target key end

     0   :  { %s163_s0 = inlined_call_operand.vmem [shape: f32[8,16], index: 0, kind: input, shape index: {}]   ;;  %s164_s1 = inlined_call_operand.vmem [shape: s32[8,1], index: 1, kind: input, shape index: {}]   ;;  %s165_s2 = inlined_call_operand.hbm [shape: f32[1,1], index: 2, kind: output, shape index: {}]  }
   0x1   :  { %v53_v0 = vld [vmem:[%s164_s1] sm:$0xff] }
   0x2   :  { %7 = vsyncpa [#allocation3], 0  ;;  %v137_v1 = vmov 0   ;;  %v54_v2 = vlaneseq  ;;  %v52_v4 = vld [vmem:[%s163_s0] sm:$0xff]  ;;  %vm61_vm0 = vcmask 130048   ;;  %vm75_vm2 = vcmask 7168  }
   0x3   :  { %122 = vset.pattern.permute.xlu0 %v137_v1  ;;  %s95_s13 = sshll.u32 %s165_s2, 4  ;;  %s138_s16 = smov [#allocation2]   ;;  %s96_s13 = int_to_ptr.hbm [resolvable:$true] %s95_s13 }
   0x4   :  { %57 = vperm.xlu0 %122, %v53_v0   ;;  %v55_v3 = vand.u32 127, %v54_v2 }
  0x76   :  { %v58_v5 = vpop.permute.xlu0 %57 }
  0x77   :  { %vm59_vm1 = vcmp.eq.s32.totalorder %v55_v3, %v58_v5 }
  0x78   :  { %v60_v6 = vsel %vm59_vm1, %v52_v4, 0.0 }
  0x79   :  { %v62_v7 = vsel %vm61_vm0, %v60_v6, 0.0 }
  0x7a   :  { %63 = vadd.xlane.f32.xlu0 %v62_v7 }
  0xed   :  { %v64_v8 = vpop.xlane.xlu0 %63 }
  0xee   :  { %v76_v9 = vsel %vm75_vm2, %v64_v8, 0.0 }
  0xef   :  { %77 = vadd.xlane.f32.xlu1 %v76_v9 }
 0x162   :  { %v78_v10 = vpop.xlane.xlu1 %77 }
 0x163   :  { %v79_v11 = vrot.slane %v78_v10, 4 }
 0x165   :  { %v80_v12 = vadd.f32 %v79_v11, %v78_v10 }
 0x167   :  { %v81_v13 = vrot.slane %v80_v12, 2 }
 0x169   :  { %v82_v14 = vadd.f32 %v81_v13, %v80_v12 }
 0x16b   :  { %v83_v15 = vrot.slane %v82_v14, 1 }
 0x16d   :  { %v84_v16 = vadd.f32 %v83_v15, %v82_v14 }
 0x16f   :  { %117 = vpush %v84_v16 }
 0x1a0   :  { %s118_s14 = spop %117 }
 0x1a1   :  { %s86_s15 = ssub.f32 0.0, %s118_s14 }
 0x1a3   :  { %89 = sst [smem:[#allocation2]] %s86_s15 }
 0x1a4   :  { %98 = dma.smem_to_hbm %s138_s16, 16, %s96_s13, [#allocation3]  }
 0x1a5   :  { %135 = dma.done.wait [#allocation3], 16  }
 0x1a6   :  { %136 = vsyncadd [#allocation3], 4294967280 }
 0x1a7   :  { %103 = sfence }
 0x1a8   :  { %104 = vsyncpa [#allocation3], 1 }

</bundles_post_ra>
